<compile_context>
chip_gen: v5e
topology: v5e:2x2
jax: 0.10.0
libtpu: 0.0.40
codegen_flags: <defaults>
</compile_context>

<pallas_src>
import functools

import jax
import jax.numpy as jnp
from jax.experimental import pallas as pl
from jax.experimental.pallas import tpu as pltpu


_EPS = 1e-30  # clamp for log(); torch.svd singular values are >= 0 anyway.


def _spd_log_kernel(u_ref, s_ref, o_ref, *, cast_bf16, mul_in_bf16, eps):
    """Batched: o[b] = U[b] @ diag(log s[b]) @ U[b]^T.

    u_ref: (TB, N, N) eigenvectors (columns)
    s_ref: (TB, 1, N) eigenvalues
    o_ref: (TB, N, N) matrix logarithm
    """
    u = u_ref[...]                                       # (TB, N, N)
    # torch.svd of a symmetric matrix returns |eigenvalues|; abs + eps keeps
    # log() finite for numerically semi-definite inputs and for any padded
    # remainder batch entries (discarded by the wrapper).
    log_s = jnp.log(jnp.maximum(jnp.abs(s_ref[...]), eps))  # (TB, 1, N) -> EUP

    if cast_bf16 and mul_in_bf16:
        # v6e/v7x: bf16 VPU available -> cast u once, scale in bf16; only one
        # narrow intermediate lives in VMEM.
        u_mm = u.astype(jnp.bfloat16)
        tmp = u_mm * log_s.astype(jnp.bfloat16)
    elif cast_bf16:
        # v5e: no bf16 VPU -> scale columns in f32, feed the MXU in bf16.
        u_mm = u.astype(jnp.bfloat16)
        tmp = (u * log_s).astype(jnp.bfloat16)
    else:
        u_mm = u
        tmp = u * log_s                                   # VPU column scaling

    # Batched contraction over the last dims of both operands (no explicit .T,
    # so no per-matrix XLU transpose before the MXU).
    out = jnp.einsum("bij,bkj->bik", tmp, u_mm,
                     preferred_element_type=jnp.float32)
    o_ref[...] = out.astype(o_ref.dtype)


def _generation_config():
    """Per-TPU-generation tiling / dtype policy."""
    kind = ""
    try:
        kind = jax.devices()[0].device_kind.lower()
    except Exception:
        pass
    if "v6" in kind:
        gen = "v6e"
    elif "v5 lite" in kind or "v5e" in kind or "v5lite" in kind:
        gen = "v5e"
    elif "v7" in kind or "7x" in kind:
        gen = "v7x"
    else:
        gen = "other"

    try:
        vmem_cap = int(pltpu.get_tpu_info().vmem_capacity_bytes)
    except Exception:
        vmem_cap = (64 << 20) if gen == "v7x" else (128 << 20)

    cfg = {
        # block_budget: target bytes per u / out block (double-buffered).
        # bf16_n: N crossover above which bf16 MXU operands pay off.
        "v5e":   dict(block_budget=8 << 20, vmem_limit=64 << 20,
                      bf16_n=512, bf16_mul=False, two_tc=False),
        "v6e":   dict(block_budget=8 << 20, vmem_limit=96 << 20,
                      bf16_n=1280, bf16_mul=True, two_tc=False),
        "v7x":   dict(block_budget=6 << 20, vmem_limit=48 << 20,
                      bf16_n=640, bf16_mul=True, two_tc=True),
        "other": dict(block_budget=4 << 20, vmem_limit=64 << 20,
                      bf16_n=1024, bf16_mul=False, two_tc=False),
    }[gen]

    # Capacity-aware safety: footprint ~= 6x block bytes (double-buffered
    # u/out blocks + f32 accumulator + scale intermediate) must fit the scoped
    # limit, and the limit must leave headroom under physical VMEM.
    cfg["vmem_limit"] = min(cfg["vmem_limit"], int(vmem_cap * 3 // 4))
    cfg["block_budget"] = min(cfg["block_budget"],
                              max(1 << 20, cfg["vmem_limit"] // 6))
    return cfg


def spd_tangent_space(x, vectorize=True, *, min_pallas_n=128,
                      force_pallas=False, matmul_dtype=None):
    """Equivalent of SPDTangentSpace.forward for a batch of SPD matrices.

    x: (B, N, N) SPD matrices.
    Returns (B, N*(N+1)//2) if vectorize else (B, N, N).
    """
    B, N, _ = x.shape

    # TODO(synk): torch.svd / symmetric eigendecomposition has no Pallas
    # primitive; computed with jnp.linalg.eigh in the wrapper (identical to
    # svd for SPD inputs up to ordering/sign, which cancels in U log(S) U^T).
    s, u = jnp.linalg.eigh(x)                     # s: (B, N), u: (B, N, N)

    use_pallas = force_pallas or (N >= min_pallas_n)

    if not use_pallas:
        # Small N: every matrix pads an (8,128) VMEM tile, the MXU sits idle
        # and eigh dominates -> let XLA do the fused batched matmul.
        log_s = jnp.log(jnp.maximum(jnp.abs(s), _EPS))
        logm = jnp.einsum("bij,bj,bkj->bik", u, log_s, u).astype(x.dtype)
    else:
        cfg = _generation_config()
        itemsize = jnp.dtype(x.dtype).itemsize
        bytes_per_mat = N * N * itemsize

        # Batch tile: biggest block that fits the per-generation budget
        # (large contiguous DMAs, amortized ~0.35us/step overhead).
        budget_tb = max(1, int(cfg["block_budget"] // bytes_per_mat))
        tb = int(min(budget_tb, B))
        if cfg["two_tc"] and B >= 2:
            # v7x: two TensorCores share the "parallel" batch axis -> keep
            # >= 2 grid steps and prefer an even step count so neither core
            # gets an extra block.
            cap = max(1, min(tb, pl.cdiv(B, 2)))
            tb = cap
            for cand in range(cap, 0, -1):
                if pl.cdiv(B, cand) % 2 == 0:
                    tb = cand
                    break
        grid_b = pl.cdiv(B, tb)

        if matmul_dtype is None:
            cast_bf16 = (x.dtype == jnp.float32) and (N >= cfg["bf16_n"])
        else:
            cast_bf16 = jnp.dtype(matmul_dtype) == jnp.dtype(jnp.bfloat16)
        mul_in_bf16 = cast_bf16 and cfg["bf16_mul"]

        kernel = functools.partial(_spd_log_kernel, cast_bf16=cast_bf16,
                                   mul_in_bf16=mul_in_bf16, eps=_EPS)

        cost = pl.CostEstimate(
            flops=2 * B * N * N * N + 2 * B * N * N,
            transcendentals=B * N,
            bytes_accessed=(2 * B * N * N + B * N) * itemsize,
        )

        s3 = s.reshape(B, 1, N)
        logm = pl.pallas_call(
            kernel,
            out_shape=jax.ShapeDtypeStruct((B, N, N), x.dtype),
            grid=(grid_b,),
            in_specs=[
                pl.BlockSpec((tb, N, N), lambda b: (b, 0, 0)),
                pl.BlockSpec((tb, 1, N), lambda b: (b, 0, 0)),
            ],
            out_specs=pl.BlockSpec((tb, N, N), lambda b: (b, 0, 0)),
            compiler_params=pltpu.CompilerParams(
                dimension_semantics=("parallel",),
                vmem_limit_bytes=int(cfg["vmem_limit"]),
            ),
            cost_estimate=cost,
        )(u, s3)

    if vectorize:
        # SPDVectorize: upper-triangular entries in torch.triu_indices order,
        # as a flat 1-D gather on the last axis.
        row_idx, col_idx = jnp.triu_indices(N)
        flat_idx = row_idx * N + col_idx
        logm = jnp.take(logm.reshape(B, N * N), flat_idx, axis=1)
    return logm


if __name__ == "__main__":
    key = jax.random.PRNGKey(0)
    B, N = 2, 16

    # Deterministic SPD inputs: x = A A^T + 0.5 I
    a = jax.random.normal(key, (B, N, N), dtype=jnp.float32)
    x = jnp.einsum("bij,bkj->bik", a, a) + 0.5 * jnp.eye(N, dtype=jnp.float32)

    # Pure-JAX reference: triu of U diag(log lambda) U^T.
    s_ref, u_ref = jnp.linalg.eigh(x)
    logm_ref = jnp.einsum("bij,bj,bkj->bik", u_ref, jnp.log(s_ref), u_ref)
    r, c = jnp.triu_indices(N)
    ref = logm_ref[:, r, c]

    # 1) Default dispatch: N < 128 -> XLA bypass path (Pallas is pure
    #    overhead at this size).
    out_xla = jax.block_until_ready(spd_tangent_space(x, vectorize=True))

    # 2) Pallas kernel path, forced at the small demo size (f32 operands).
    out_pl = jax.block_until_ready(
        spd_tangent_space(x, vectorize=True, force_pallas=True))

    # 3) Pallas kernel path with bf16 MXU operands (normally only enabled
    #    above the per-generation crossover); loose tolerance.
    out_bf16 = jax.block_until_ready(
        spd_tangent_space(x, vectorize=True, force_pallas=True,
                          matmul_dtype=jnp.bfloat16))

    assert out_pl.shape == (B, N * (N + 1) // 2)
    assert jnp.allclose(out_xla, ref, atol=1e-4, rtol=1e-4)
    assert jnp.allclose(out_pl, ref, atol=1e-4, rtol=1e-4)
    assert jnp.allclose(out_bf16, ref, atol=1e-1, rtol=5e-2)

    print("KERNEL_OK")
</pallas_src>

<mosaic_0001>
module attributes {stable_mosaic.version = 11 : i64} {
  func.func @_spd_log_kernel(%arg0: i32, %arg1: memref<2x16x16xf32, #tpu.memory_space<vmem>>, %arg2: memref<2x1x16xf32, #tpu.memory_space<vmem>>, %arg3: memref<2x16x16xf32, #tpu.memory_space<vmem>>) attributes {dimension_semantics = [#tpu.dimension_semantics<parallel>], iteration_bounds = array<i64: 1>, scalar_prefetch = 0 : i64, scratch_operands = 0 : i64, tpu.core_type = #tpu.core_type<tc>, window_params = [{transform_indices = @transform_0, window_bounds = array<i64: 2, 16, 16>}, {transform_indices = @transform_1, window_bounds = array<i64: 2, 1, 16>}, {transform_indices = @transform_2, window_bounds = array<i64: 2, 16, 16>}]} {
    %c0 = arith.constant 0 : index
    %c0_0 = arith.constant 0 : index
    %c0_1 = arith.constant 0 : index
    %0 = vector.load %arg1[%c0, %c0_0, %c0_1] : memref<2x16x16xf32, #tpu.memory_space<vmem>>, vector<2x16x16xf32>
    %c0_2 = arith.constant 0 : index
    %c0_3 = arith.constant 0 : index
    %c0_4 = arith.constant 0 : index
    %1 = vector.load %arg2[%c0_2, %c0_3, %c0_4] : memref<2x1x16xf32, #tpu.memory_space<vmem>>, vector<2x1x16xf32>
    %2 = math.absf %1 : vector<2x1x16xf32>
    %cst = arith.constant 1.000000e-30 : f32
    %3 = vector.broadcast %cst : f32 to vector<2x1x16xf32>
    %4 = arith.maximumf %2, %3 : vector<2x1x16xf32>
    %5 = math.log %4 : vector<2x1x16xf32>
    %6 = vector.broadcast %5 : vector<2x1x16xf32> to vector<2x16x16xf32>
    %7 = arith.mulf %0, %6 : vector<2x16x16xf32>
    "tpu.trace_start"() <{level = 10 : i32, message = "bij,bkj->bik"}> : () -> ()
    %cst_5 = arith.constant dense<0.000000e+00> : vector<2x16x16xf32>
    %8 = tpu.matmul %7, %0, %cst_5 {dimension_numbers = #tpu.dot_dimension_numbers<[2], [2], [1], [1], [0, 0, 0, 1, 1, 1], [0], [0]>} : vector<2x16x16xf32>, vector<2x16x16xf32>, vector<2x16x16xf32> -> vector<2x16x16xf32>
    "tpu.trace_stop"() : () -> ()
    %c0_6 = arith.constant 0 : index
    %c0_7 = arith.constant 0 : index
    %c0_8 = arith.constant 0 : index
    %9 = vector.load %arg3[%c0_6, %c0_7, %c0_8] : memref<2x16x16xf32, #tpu.memory_space<vmem>>, vector<2x16x16xf32>
    tpu.vector_store %arg3[%c0_6, %c0_7, %c0_8], %8 {strides = array<i32>} : memref<2x16x16xf32, #tpu.memory_space<vmem>>, vector<2x16x16xf32>,
    return
  }
  func.func @transform_0(%arg0: i32) -> (i32, i32, i32) {
    %c0_i32 = arith.constant 0 : i32
    %c0_i32_0 = arith.constant 0 : i32
    %c0_i32_1 = arith.constant 0 : i32
    return %arg0, %c0_i32, %c0_i32_0 : i32, i32, i32
  }
  func.func @transform_1(%arg0: i32) -> (i32, i32, i32) {
    %c0_i32 = arith.constant 0 : i32
    %c0_i32_0 = arith.constant 0 : i32
    %c0_i32_1 = arith.constant 0 : i32
    return %arg0, %c0_i32, %c0_i32_0 : i32, i32, i32
  }
  func.func @transform_2(%arg0: i32) -> (i32, i32, i32) {
    %c0_i32 = arith.constant 0 : i32
    %c0_i32_0 = arith.constant 0 : i32
    %c0_i32_1 = arith.constant 0 : i32
    return %arg0, %c0_i32, %c0_i32_0 : i32, i32, i32
  }
}

</mosaic_0001>

<bundles_post_ra>
// kernel: tpu_custom_call.1
= control target key start
LH: loop header
LB: loop body
LE: loop exit
PB: predicated region body
PF: predicated region fallthrough
CT: control target
= control target key end

     0   :  { %7 = vsyncpa [#allocation3], 0  ;;  %s317_s0 = inlined_call_operand.hbm [shape: f32[2,16,16], index: 0, kind: input, shape index: {}]   ;;  %s318_s1 = inlined_call_operand.hbm [shape: f32[2,1,16], index: 1, kind: input, shape index: {}]   ;;  %s319_s2 = inlined_call_operand.hbm [shape: f32[2,16,16], index: 2, kind: output, shape index: {}]  }
   0x1   :  { %8 = vsyncpa [#allocation6], 0 }
   0x2   :  { %9 = vsyncpa [#allocation4], 0  ;;  %s14_s11 = sshll.u32 %s317_s0, 4  ;;  %s264_s12 = smov [#allocation2]   ;;  %s15_s11 = int_to_ptr.hbm [resolvable:$true] %s14_s11 }
   0x3   :  { %s16_s13 = sshll.u32 %s264_s12, 4  ;;  %s27_s16 = sshll.u32 %s318_s1, 4  ;;  %s17_s13 = int_to_ptr.vmem [resolvable:$true] %s16_s13  ;;  %s28_s16 = int_to_ptr.hbm [resolvable:$true] %s27_s16 }
   0x4   :  { %s265_s17 = smov 128   ;;  %s266_s18 = smov 8  }
   0x5   :  { %22 = dma.hbm_to_vmem [thread:$0]  %s15_s11, 512, %s17_s13, [#allocation3], %s265_s17, %s265_s17, %s266_s18  }
   0x6   :  { %s267_s19 = smov [#allocation5]   ;;  %s268_s21 = smov 16  }
   0x7   :  { %s29_s20 = sshll.u32 %s267_s19, 4  ;;  %s269_s0 = smov 1   ;;  %s30_s20 = int_to_ptr.vmem [resolvable:$true] %s29_s20 }
   0x8   :  { %35 = dma.hbm_to_vmem [thread:$0]  %s28_s16, 32, %s30_s20, [#allocation6], %s268_s21, %s268_s21, %s269_s0  }
   0x9   :  { %258 = dma.done.wait [#allocation3], 512  }
   0xa   :  { %259 = vsyncadd [#allocation3], 4294966784 }
   0xb   :  { %260 = dma.done.wait [#allocation6], 32  }
   0xc   :  { %261 = vsyncadd [#allocation6], 4294967264  ;;  %vm68_vm0 = vcmask 130048   ;;  %v45_v0 = vld [vmem:[#allocation2 + $0x8] sm:$0xff]  ;;  %v47_v1 = vld [vmem:[#allocation2 + $0x18] sm:$0xff]  ;;  %s270_s1 = smov [#allocation7]  }
   0xd   :  { %171 = vmatpush.xpose.msk.msra.mxu2 %vm68_vm0, %v45_v0  ;;  %173 = vmatpush.xpose.msk.msra.mxu3 %vm68_vm0, %v47_v1  ;;  %v48_v2 = vld [vmem:[#allocation5] sm:$0x1]  ;;  %v49_v3 = vld [vmem:[#allocation5 + $0x1] sm:$0x1]  ;;  %v46_v5 = vld [vmem:[#allocation2 + $0x10] sm:$0xff]  ;;  %s147_s22 = sshll.u32 %s270_s1, 4  ;;  %s148_s22 = int_to_ptr.vmem [resolvable:$true] %s147_s22 }
   0xe   :  { %v44_v4 = vld [vmem:[#allocation2] sm:$0xff]  ;;  %163 = vmatpush.xpose.msk.msra.mxu0 %vm68_vm0, %v45_v0  ;;  %167 = vmatpush.xpose.msk.msra.mxu1 %vm68_vm0, %v47_v1  ;;  %v50_v6 = vand.u32 2147483647, %v48_v2  ;;  %v51_v7 = vand.u32 2147483647, %v49_v3  ;;  %s149_s25 = sshll.u32 %s319_s2, 4  ;;  %s150_s25 = int_to_ptr.hbm [resolvable:$true] %s149_s25 }
  0x10   :  { %v52_v8 = vmax.f32 %v50_v6, 1e-30  ;;  %v53_v9 = vmax.f32 %v51_v7, 1e-30 }
  0x11   :  { %172 = vmatpush.xpose.msk.msra.mxu2 %vm68_vm0, %v44_v4  ;;  %174 = vmatpush.xpose.msk.msra.mxu3 %vm68_vm0, %v46_v5 }
  0x12   :  { %182 = vlog2.f32 %v52_v8  ;;  %164 = vmatpush.xpose.msk.msra.mxu0 %vm68_vm0, %v44_v4  ;;  %168 = vmatpush.xpose.msk.msra.mxu1 %vm68_vm0, %v46_v5 }
  0x13   :  { %184 = vlog2.f32 %v53_v9 }
  0x18   :  { %v183_v10 = vpop.eup %182 }
  0x19   :  { %v185_v11 = vpop.eup %184  ;;  %v55_v12 = vmul.f32 0.6931472, %v183_v10 }
  0x1a   :  { %v57_v13 = vmul.f32 0.6931472, %v185_v11 }
  0x1b   :  { %v60_v14 = vperm.slane %v55_v12, 0 }
  0x1c   :  { %v61_v15 = vperm.slane %v57_v13, 0 }
  0x1d   :  { %v65_v16 = vmul.f32 %v60_v14, %v45_v0  ;;  %v64_v17 = vmul.f32 %v60_v14, %v44_v4 }
  0x1e   :  { %v67_v18 = vmul.f32 %v61_v15, %v47_v1  ;;  %v66_v19 = vmul.f32 %v61_v15, %v46_v5 }
  0x1f   :  { %166 = vmatmul.msk.f32.vlgmr.msra.gmra.mxu2 %vm68_vm0, %v65_v16  ;;  %165 = vmatmul.msk.f32.vlgmr.msra.gmra.mxu0 %vm68_vm0, %v64_v17 }
  0x20   :  { %170 = vmatmul.msk.f32.vlgmr.msra.gmra.mxu3 %vm68_vm0, %v67_v18  ;;  %169 = vmatmul.msk.f32.vlgmr.msra.gmra.mxu1 %vm68_vm0, %v66_v19 }
  0x9c   :  { %v98_v20 = vpop.f32.mrf.mxu0 }
  0x9d   :  { %139 = vst.msk [vmem:[#allocation7] sm:$0xff] %vm68_vm0, %v98_v20  ;;  %v133_v21 = vpop.f32.mrf.mxu1 }
  0x9e   :  { %141 = vst.msk [vmem:[#allocation7 + $0x10] sm:$0xff] %vm68_vm0, %v133_v21 }
  0xa2   :  { %v101_v22 = vpop.f32.mrf.mxu2 }
  0xa3   :  { %140 = vst.msk [vmem:[#allocation7 + $0x8] sm:$0xff] %vm68_vm0, %v101_v22  ;;  %v136_v23 = vpop.f32.mrf.mxu3 }
  0xa4   :  { %142 = vst.msk [vmem:[#allocation7 + $0x18] sm:$0xff] %vm68_vm0, %v136_v23 }
  0xa5   :  { %155 = dma.vmem_to_hbm [thread:$0]  %s148_s22, 512, %s150_s25, [#allocation4], %s265_s17, %s265_s17, %s266_s18  }
  0xa6   :  { %262 = dma.done.wait [#allocation4], 512  }
  0xa7   :  { %263 = vsyncadd [#allocation4], 4294966784 }
  0xa8   :  { %160 = vsyncpa [#allocation3], 1 }
  0xa9   :  { %161 = vsyncpa [#allocation6], 1 }
  0xaa   :  { %162 = vsyncpa [#allocation4], 1 }

</bundles_post_ra>
